<compile_context>
chip_gen: v5e
topology: v5e:2x2
jax: 0.10.0
libtpu: 0.0.40
codegen_flags: <defaults>
</compile_context>

<pallas_src>
import jax
import jax.numpy as jnp
from jax.experimental import pallas as pl
from jax.experimental.pallas import tpu as pltpu

LANE = 128  # pad the final output feature dim to a lane-dense multiple of this


# ----------------------------- Pallas kernel ------------------------------- #

def fused_expl_kernel(adj_ref, x_ref, gw1_ref, gb1_ref, gw2_ref,
                      adj_sel_ref, sw1a_ref, side_ref, sw2_ref, out_ref):
    """ExplModel forward: 2-layer GCN (gather-reassociated) -> concat-free MLP."""
    f32 = jnp.float32
    bf16 = jnp.bfloat16

    # ---- GCN layer 1 (reassociated): h1 = relu(A @ (X @ W1) + b1) ----
    xw = jnp.dot(x_ref[...], gw1_ref[...], preferred_element_type=f32)       # [N, H] f32
    h1 = jnp.dot(adj_ref[...], xw.astype(bf16), preferred_element_type=f32)  # [N, H] f32
    h1 = jnp.maximum(h1 + gb1_ref[...], 0.0)                                 # f32 VPU

    # ---- GCN layer 2 reassociated around the sample gather ----
    #   node_repr = node_out[idx] = A[idx] @ (h1 @ W2) + b2
    # (+b2 contribution is folded into side_ref in the wrapper via b2 @ W1a)
    hw = jnp.dot(h1.astype(bf16), gw2_ref[...], preferred_element_type=f32)  # [N, H] f32
    node_repr = jnp.dot(adj_sel_ref[...], hw.astype(bf16),
                        preferred_element_type=f32)                          # [S, H] f32

    # ---- MLP layer 1, concat-free; sample-side branch precomputed in side_ref ----
    m = jnp.dot(node_repr, sw1a_ref[...], preferred_element_type=f32) + side_ref[...]
    m = jnp.maximum(m, 0.0)                                                  # [S, HID] f32

    # ---- MLP layer 2 into a lane-dense (S, C_pad) slab (s_b2 added post-kernel) ----
    out_ref[...] = jnp.dot(m, sw2_ref[...], preferred_element_type=f32)


def _vmem_spec():
    return pl.BlockSpec(memory_space=pltpu.MemorySpace.VMEM)


# --------------------------- JAX wrapper (jitted) --------------------------- #

@jax.jit
def expl_model_forward(embed, adj, sample_node_idx, sample_node_feature,
                       sample_idx, sample_feature, gparams, sparams):
    g_w1, g_b1, g_w2, g_b2 = gparams
    s_w1, s_b1, s_w2, s_b2 = sparams

    n, d = embed.shape
    h = g_w2.shape[1]
    s, f1 = sample_node_feature.shape
    hid = s_w1.shape[1]
    c = s_w2.shape[1]

    bf16 = jnp.bfloat16
    f32 = jnp.float32

    g_b1_2d = jnp.reshape(g_b1, (1, -1)).astype(f32)
    g_b2_2d = jnp.reshape(g_b2, (1, -1)).astype(f32)
    s_b1_2d = jnp.reshape(s_b1, (1, -1)).astype(f32)
    s_b2_2d = jnp.reshape(s_b2, (1, -1)).astype(f32)

    # Exact XLA row-gather of the S selected adjacency rows: lets the kernel compute
    # node_repr = adj_sel @ (h1 @ W2) instead of the full N*N second aggregation.
    adj_sel = adj[sample_node_idx].astype(bf16)                         # [S, N]

    # Split the MLP's first weight matrix into row blocks matching
    # concat([node_repr, sample_node_feature, samp_repr]).
    s_w1a = s_w1[:h].astype(f32)                                        # [H,  HID]
    s_w1b = s_w1[h:h + f1].astype(f32)                                  # [F1, HID]
    s_w1c = s_w1[h + f1:].astype(f32)                                   # [F2, HID]

    # Sample-side MLP branch (GCN-independent): exact f32 gather + two small matmuls
    # in the wrapper; also fold s_b1 and the GCN layer-2 bias term (b2 @ W1a).
    samp_repr = sample_feature[sample_idx].astype(f32)                  # [S, F2]
    mlp_side = (sample_node_feature.astype(f32) @ s_w1b
                + samp_repr @ s_w1c
                + s_b1_2d
                + g_b2_2d @ s_w1a)                                      # [S, HID] f32

    # Zero-pad the output feature dim to a lane-dense multiple of 128 so the kernel's
    # final store is an unmasked full-vreg vst; slice back (and add s_b2) after.
    c_pad = pl.cdiv(c, LANE) * LANE
    s_w2_p = jnp.zeros((hid, c_pad), f32).at[:, :c].set(s_w2.astype(f32))

    # --- advisory cost + VMEM budget (shapes are static under jit) ---
    flops = 2 * (n * d * h          # X @ W1
                 + n * n * h        # A @ xw
                 + n * h * h        # h1 @ W2
                 + s * n * h        # adj_sel @ hw
                 + s * h * hid      # node_repr @ W1a
                 + s * hid * c_pad)  # m @ W2_pad
    in_bytes = (2 * (n * n + n * d + d * h + h * h + s * n)     # bf16 operands
                + 4 * (h + s * hid + h * hid + hid * c_pad))    # f32 operands
    out_bytes = 4 * s * c_pad
    interm_bytes = 4 * (3 * n * h + 2 * s * max(h, hid, c_pad))
    vmem_limit = min(max(2 * (in_bytes + out_bytes) + interm_bytes + (4 << 20),
                         16 << 20),
                     64 << 20)  # cap at v7x physical VMEM; see large-N TODO above

    out_padded = pl.pallas_call(
        fused_expl_kernel,
        out_shape=jax.ShapeDtypeStruct((s, c_pad), f32),
        in_specs=[_vmem_spec() for _ in range(9)],
        out_specs=_vmem_spec(),
        compiler_params=pltpu.CompilerParams(vmem_limit_bytes=vmem_limit),
        cost_estimate=pl.CostEstimate(flops=flops, transcendentals=0,
                                      bytes_accessed=in_bytes + out_bytes),
    )(
        adj.astype(bf16), embed.astype(bf16),
        g_w1.astype(bf16), g_b1_2d, g_w2.astype(bf16),
        adj_sel, s_w1a, mlp_side, s_w2_p,
    )
    # Final bias + slice back to the true class width (fuses into one tiny XLA op).
    return out_padded[:, :c] + s_b2_2d


def expl_model_forward_ref(embed, adj, sample_node_idx, sample_node_feature,
                           sample_idx, sample_feature, gparams, sparams):
    """Pure-JAX f32 reference with the original op order (for validation)."""
    g_w1, g_b1, g_w2, g_b2 = gparams
    s_w1, s_b1, s_w2, s_b2 = sparams
    h1 = jnp.maximum(adj @ embed @ g_w1 + g_b1, 0.0)
    node_out = adj @ h1 @ g_w2 + g_b2
    node_repr = node_out[sample_node_idx]
    samp_repr = sample_feature[sample_idx]
    z = jnp.concatenate([node_repr, sample_node_feature, samp_repr], axis=-1)
    return jnp.maximum(z @ s_w1 + s_b1, 0.0) @ s_w2 + s_b2


# ---------------------------------- main ----------------------------------- #

if __name__ == "__main__":
    # Small, forward-consistent shapes
    N = 32       # number of graph nodes
    D = 32       # embedding dim
    H = 32       # GCN hidden / output dim
    S = 8        # number of samples
    F1 = 16      # per-sample node-feature dim
    F2 = 16      # sample-feature table feature dim
    M = 16       # sample-feature table rows
    HID = 32     # MLP hidden dim
    C = 2        # output classes

    key = jax.random.PRNGKey(0)
    keys = jax.random.split(key, 10)

    # Deterministic parameter init (synthetic; no checkpoint load)
    g_w1 = 0.1 * jax.random.normal(keys[0], (D, H), jnp.float32)
    g_b1 = jnp.zeros((1, H), jnp.float32)
    g_w2 = 0.1 * jax.random.normal(keys[1], (H, H), jnp.float32)
    g_b2 = jnp.zeros((1, H), jnp.float32)
    gparams = (g_w1, g_b1, g_w2, g_b2)

    mlp_in = H + F1 + F2
    s_w1 = 0.1 * jax.random.normal(keys[2], (mlp_in, HID), jnp.float32)
    s_b1 = jnp.zeros((1, HID), jnp.float32)
    s_w2 = 0.1 * jax.random.normal(keys[3], (HID, C), jnp.float32)
    s_b2 = jnp.zeros((1, C), jnp.float32)
    sparams = (s_w1, s_b1, s_w2, s_b2)

    # Inputs
    embed = jax.random.normal(keys[4], (N, D), jnp.float32)
    # symmetric row-normalized dense adjacency (self-loops included)
    a_raw = (jax.random.uniform(keys[5], (N, N)) > 0.8).astype(jnp.float32)
    a_sym = jnp.clip(a_raw + a_raw.T + jnp.eye(N, dtype=jnp.float32), 0.0, 1.0)
    adj = a_sym / jnp.sum(a_sym, axis=-1, keepdims=True)

    sample_node_idx = jax.random.randint(keys[6], (S,), 0, N)
    sample_node_feature = jax.random.normal(keys[7], (S, F1), jnp.float32)
    sample_idx = jax.random.randint(keys[8], (S,), 0, M)
    sample_feature = jax.random.normal(keys[9], (M, F2), jnp.float32)

    pred = expl_model_forward(embed, adj, sample_node_idx, sample_node_feature,
                              sample_idx, sample_feature, gparams, sparams)
    pred = jax.block_until_ready(pred)

    ref = expl_model_forward_ref(embed, adj, sample_node_idx, sample_node_feature,
                                 sample_idx, sample_feature, gparams, sparams)

    assert pred.shape == (S, C)
    assert bool(jnp.all(jnp.isfinite(pred)))
    # bf16 MXU inputs on the GCN aggregations / f32 accumulation -> loose tolerance
    assert bool(jnp.allclose(pred, ref, atol=3e-2, rtol=3e-2))
    print("KERNEL_OK")
</pallas_src>

<mosaic_0001>
module attributes {stable_mosaic.version = 11 : i64} {
  func.func @fused_expl_kernel(%arg0: memref<32x32xbf16, #tpu.memory_space<vmem>>, %arg1: memref<32x32xbf16, #tpu.memory_space<vmem>>, %arg2: memref<32x32xbf16, #tpu.memory_space<vmem>>, %arg3: memref<1x32xf32, #tpu.memory_space<vmem>>, %arg4: memref<32x32xbf16, #tpu.memory_space<vmem>>, %arg5: memref<8x32xbf16, #tpu.memory_space<vmem>>, %arg6: memref<32x32xf32, #tpu.memory_space<vmem>>, %arg7: memref<8x32xf32, #tpu.memory_space<vmem>>, %arg8: memref<32x128xf32, #tpu.memory_space<vmem>>, %arg9: memref<8x128xf32, #tpu.memory_space<vmem>>) attributes {dimension_semantics = [], scalar_prefetch = 0 : i64, scratch_operands = 0 : i64, tpu.core_type = #tpu.core_type<tc>} {
    %c0 = arith.constant 0 : index
    %c0_0 = arith.constant 0 : index
    %0 = vector.load %arg1[%c0, %c0_0] : memref<32x32xbf16, #tpu.memory_space<vmem>>, vector<32x32xbf16>
    %c0_1 = arith.constant 0 : index
    %c0_2 = arith.constant 0 : index
    %1 = vector.load %arg2[%c0_1, %c0_2] : memref<32x32xbf16, #tpu.memory_space<vmem>>, vector<32x32xbf16>
    %cst = arith.constant dense<0.000000e+00> : vector<32x32xf32>
    %2 = tpu.matmul %0, %1, %cst {dimension_numbers = #tpu.dot_dimension_numbers<[1], [0], [0], [1], [0, 0, 1, 1], [], []>} : vector<32x32xbf16>, vector<32x32xbf16>, vector<32x32xf32> -> vector<32x32xf32>
    %c0_3 = arith.constant 0 : index
    %c0_4 = arith.constant 0 : index
    %3 = vector.load %arg0[%c0_3, %c0_4] : memref<32x32xbf16, #tpu.memory_space<vmem>>, vector<32x32xbf16>
    %4 = arith.truncf %2 : vector<32x32xf32> to vector<32x32xbf16>
    %cst_5 = arith.constant dense<0.000000e+00> : vector<32x32xf32>
    %5 = tpu.matmul %3, %4, %cst_5 {dimension_numbers = #tpu.dot_dimension_numbers<[1], [0], [0], [1], [0, 0, 1, 1], [], []>} : vector<32x32xbf16>, vector<32x32xbf16>, vector<32x32xf32> -> vector<32x32xf32>
    %c0_6 = arith.constant 0 : index
    %c0_7 = arith.constant 0 : index
    %6 = vector.load %arg3[%c0_6, %c0_7] : memref<1x32xf32, #tpu.memory_space<vmem>>, vector<1x32xf32>
    %7 = vector.broadcast %6 : vector<1x32xf32> to vector<32x32xf32>
    %8 = arith.addf %5, %7 : vector<32x32xf32>
    %cst_8 = arith.constant 0.000000e+00 : f32
    %9 = vector.broadcast %cst_8 : f32 to vector<32x32xf32>
    %10 = arith.maximumf %8, %9 : vector<32x32xf32>
    %11 = arith.truncf %10 : vector<32x32xf32> to vector<32x32xbf16>
    %c0_9 = arith.constant 0 : index
    %c0_10 = arith.constant 0 : index
    %12 = vector.load %arg4[%c0_9, %c0_10] : memref<32x32xbf16, #tpu.memory_space<vmem>>, vector<32x32xbf16>
    %cst_11 = arith.constant dense<0.000000e+00> : vector<32x32xf32>
    %13 = tpu.matmul %11, %12, %cst_11 {dimension_numbers = #tpu.dot_dimension_numbers<[1], [0], [0], [1], [0, 0, 1, 1], [], []>} : vector<32x32xbf16>, vector<32x32xbf16>, vector<32x32xf32> -> vector<32x32xf32>
    %c0_12 = arith.constant 0 : index
    %c0_13 = arith.constant 0 : index
    %14 = vector.load %arg5[%c0_12, %c0_13] : memref<8x32xbf16, #tpu.memory_space<vmem>>, vector<8x32xbf16>
    %15 = arith.truncf %13 : vector<32x32xf32> to vector<32x32xbf16>
    %cst_14 = arith.constant dense<0.000000e+00> : vector<8x32xf32>
    %16 = tpu.matmul %14, %15, %cst_14 {dimension_numbers = #tpu.dot_dimension_numbers<[1], [0], [0], [1], [0, 0, 1, 1], [], []>} : vector<8x32xbf16>, vector<32x32xbf16>, vector<8x32xf32> -> vector<8x32xf32>
    %c0_15 = arith.constant 0 : index
    %c0_16 = arith.constant 0 : index
    %17 = vector.load %arg6[%c0_15, %c0_16] : memref<32x32xf32, #tpu.memory_space<vmem>>, vector<32x32xf32>
    %cst_17 = arith.constant dense<0.000000e+00> : vector<8x32xf32>
    %18 = tpu.matmul %16, %17, %cst_17 {dimension_numbers = #tpu.dot_dimension_numbers<[1], [0], [0], [1], [0, 0, 1, 1], [], []>} : vector<8x32xf32>, vector<32x32xf32>, vector<8x32xf32> -> vector<8x32xf32>
    %c0_18 = arith.constant 0 : index
    %c0_19 = arith.constant 0 : index
    %19 = vector.load %arg7[%c0_18, %c0_19] : memref<8x32xf32, #tpu.memory_space<vmem>>, vector<8x32xf32>
    %20 = arith.addf %18, %19 : vector<8x32xf32>
    %cst_20 = arith.constant 0.000000e+00 : f32
    %21 = vector.broadcast %cst_20 : f32 to vector<8x32xf32>
    %22 = arith.maximumf %20, %21 : vector<8x32xf32>
    %c0_21 = arith.constant 0 : index
    %c0_22 = arith.constant 0 : index
    %23 = vector.load %arg8[%c0_21, %c0_22] : memref<32x128xf32, #tpu.memory_space<vmem>>, vector<32x128xf32>
    %cst_23 = arith.constant dense<0.000000e+00> : vector<8x128xf32>
    %24 = tpu.matmul %22, %23, %cst_23 {dimension_numbers = #tpu.dot_dimension_numbers<[1], [0], [0], [1], [0, 0, 1, 1], [], []>} : vector<8x32xf32>, vector<32x128xf32>, vector<8x128xf32> -> vector<8x128xf32>
    %c0_24 = arith.constant 0 : index
    %c0_25 = arith.constant 0 : index
    %25 = vector.load %arg9[%c0_24, %c0_25] : memref<8x128xf32, #tpu.memory_space<vmem>>, vector<8x128xf32>
    tpu.vector_store %arg9[%c0_24, %c0_25], %24 {strides = array<i32>} : memref<8x128xf32, #tpu.memory_space<vmem>>, vector<8x128xf32>,
    return
  }
}

</mosaic_0001>

<bundles_post_ra>
// kernel: expl_model_forward.1
= control target key start
LH: loop header
LB: loop body
LE: loop exit
PB: predicated region body
PF: predicated region fallthrough
CT: control target
= control target key end

     0   :  { %vm63_vm0 = vcmask 261120   ;;  %s430_s2 = inlined_call_operand.vmem [shape: bf16[32,32], index: 2, kind: input, shape index: {}]   ;;  %s431_s1 = inlined_call_operand.vmem [shape: bf16[32,32], index: 1, kind: input, shape index: {}]   ;;  %s432_s3 = inlined_call_operand.vmem [shape: f32[1,32], index: 3, kind: input, shape index: {}]   ;;  %s433_s0 = inlined_call_operand.vmem [shape: bf16[32,32], index: 0, kind: input, shape index: {}]   ;;  %s434_s4 = inlined_call_operand.vmem [shape: bf16[32,32], index: 4, kind: input, shape index: {}]   ;;  %s435_s6 = inlined_call_operand.vmem [shape: f32[32,32], index: 6, kind: input, shape index: {}]   ;;  %s436_s5 = inlined_call_operand.vmem [shape: bf16[8,32], index: 5, kind: input, shape index: {}]   ;;  %s437_s8 = inlined_call_operand.vmem [shape: f32[32,128], index: 8, kind: input, shape index: {}]   ;;  %s438_s7 = inlined_call_operand.vmem [shape: f32[8,32], index: 7, kind: input, shape index: {}]   ;;  %s439_s9 = inlined_call_operand.vmem [shape: f32[8,128], index: 9, kind: output, shape index: {}]  }
   0x1   :  { %v305_v0 = vld [vmem:[%s430_s2 + $0x8] sm:$0xff]  ;;  %v304_v1 = vld [vmem:[%s430_s2] sm:$0xff]  ;;  %v203_v35 = vld [vmem:[%s435_s6 + $0x18] sm:$0xff] }
   0x2   :  { %76 = vmatpush.bf16.msra.mxu0 %v305_v0  ;;  %v302_v2 = vld [vmem:[%s431_s1] sm:$0xff]  ;;  %v303_v3 = vld [vmem:[%s431_s1 + $0x8] sm:$0xff]  ;;  %v202_v37 = vld [vmem:[%s435_s6 + $0x10] sm:$0xff] }
   0x3   :  { %v306_v10 = vld [vmem:[%s433_s0] sm:$0xff]  ;;  %v307_v11 = vld [vmem:[%s433_s0 + $0x8] sm:$0xff]  ;;  %v232_v40 = vld [vmem:[%s437_s8 + $0x18] sm:$0xff] }
   0x4   :  { %v309_v12 = vld [vmem:[%s434_s4 + $0x8] sm:$0xff]  ;;  %v308_v13 = vld [vmem:[%s434_s4] sm:$0xff]  ;;  %v231_v41 = vld [vmem:[%s437_s8 + $0x10] sm:$0xff] }
   0x5   :  { %168 = vmatpush.bf16.msra.mxu2 %v309_v12  ;;  %v310_v15 = vld [vmem:[%s432_s3] ss:$0 sm:$0xff]  ;;  %v201_v38 = vld [vmem:[%s435_s6 + $0x8] sm:$0xff] }
   0x6   :  { %77 = vmatpush.bf16.msra.mxu0 %v304_v1  ;;  %v181_v36 = vld [vmem:[%s436_s5] sm:$0xf]  ;;  %v230_v44 = vld [vmem:[%s437_s8 + $0x8] sm:$0xff] }
   0x7   :  { %v200_v39 = vld [vmem:[%s435_s6] sm:$0xff] }
   0x8   :  { %v229_v45 = vld [vmem:[%s437_s8] sm:$0xff] }
   0x9   :  { %277 = vmatmul.msk.bf16.vlgmr.msra.gmra.mxu0 %vm63_vm0, %v302_v2  ;;  %169 = vmatpush.bf16.msra.mxu2 %v308_v13  ;;  %v204_v46 = vld [vmem:[%s438_s7] sm:$0xff] }
  0x19   :  { %278 = vmatmul.msk.bf16.gmra.mxu0 %vm63_vm0, %v303_v3 }
  0x86   :  { %v79_v4 = vpop.f32.mrf.mxu0 }
  0x8e   :  { %v81_v5 = vpop.f32.mrf.mxu0 }
  0x8f   :  { %v93_v9 = vpack.c.bf16 %v81_v5, %v79_v4 }
  0x96   :  { %v84_v6 = vpop.f32.mrf.mxu0 }
  0x9e   :  { %v86_v7 = vpop.f32.mrf.mxu0 }
  0x9f   :  { %v94_v8 = vpack.c.bf16 %v86_v7, %v84_v6 }
  0xa1   :  { %121 = vmatpush.bf16.msra.mxu1 %v94_v8 }
  0xa5   :  { %122 = vmatpush.bf16.msra.mxu1 %v93_v9 }
  0xa8   :  { %287 = vmatmul.msk.bf16.vlgmr.msra.gmra.mxu1 %vm63_vm0, %v306_v10 }
  0xb8   :  { %288 = vmatmul.msk.bf16.gmra.mxu1 %vm63_vm0, %v307_v11 }
 0x125   :  { %v124_v14 = vpop.f32.mrf.mxu1 }
 0x126   :  { %v125_v16 = vadd.f32 %v310_v15, %v124_v14 }
 0x128   :  { %v134_v19 = vmax.f32 %v125_v16, 0.0 }
 0x12d   :  { %v126_v17 = vpop.f32.mrf.mxu1 }
 0x12e   :  { %v127_v18 = vadd.f32 %v310_v15, %v126_v17 }
 0x130   :  { %v135_v20 = vmax.f32 %v127_v18, 0.0 }
 0x132   :  { %v138_v21 = vpack.c.bf16 %v135_v20, %v134_v19 }
 0x134   :  { %297 = vmatmul.msk.bf16.vlgmr.msra.gmra.mxu2 %vm63_vm0, %v138_v21 }
 0x135   :  { %v129_v22 = vpop.f32.mrf.mxu1 }
 0x136   :  { %v130_v23 = vadd.f32 %v310_v15, %v129_v22 }
 0x138   :  { %v136_v26 = vmax.f32 %v130_v23, 0.0 }
 0x13d   :  { %v131_v24 = vpop.f32.mrf.mxu1 }
 0x13e   :  { %v132_v25 = vadd.f32 %v310_v15, %v131_v24 }
 0x140   :  { %v137_v27 = vmax.f32 %v132_v25, 0.0 }
 0x142   :  { %v139_v28 = vpack.c.bf16 %v137_v27, %v136_v26 }
 0x144   :  { %298 = vmatmul.msk.bf16.gmra.mxu2 %vm63_vm0, %v139_v28 }
 0x1b7   :  { %v171_v29 = vpop.f32.mrf.mxu2 }
 0x1bf   :  { %v173_v30 = vpop.f32.mrf.mxu2 }
 0x1c0   :  { %v182_v34 = vpack.c.bf16 %v173_v30, %v171_v29 }
 0x1c7   :  { %v176_v31 = vpop.f32.mrf.mxu2 }
 0x1cf   :  { %v178_v32 = vpop.f32.mrf.mxu2 }
 0x1d0   :  { %v183_v33 = vpack.c.bf16 %v178_v32, %v176_v31 }
 0x1d2   :  { %193 = vmatpush.bf16.msra.mxu3 %v183_v33 }
 0x1d6   :  { %194 = vmatpush.bf16.msra.mxu3 %v182_v34 }
 0x1d9   :  { %299 = vmatmul.msk.bf16.vlgmr.msra.gmra.mxu3 %vm63_vm0, %v181_v36 }
 0x1da   :  { %220 = vmatpush.msrb.mxu3 %v203_v35 }
 0x1dc   :  { %221 = vmatpush.msrb.mxu3 %v202_v37 }
 0x1de   :  { %222 = vmatpush.msrb.mxu3 %v201_v38 }
 0x1e0   :  { %223 = vmatpush.msrb.mxu3 %v200_v39 }
 0x1e2   :  { %248 = vmatpush.msra.mxu3 %v232_v40 }
 0x1e4   :  { %249 = vmatpush.msra.mxu3 %v231_v41 }
 0x1e6   :  { %250 = vmatpush.msra.mxu3 %v230_v44 }
 0x1e8   :  { %251 = vmatpush.msra.mxu3 %v229_v45 }
 0x25c   :  { %v196_v42 = vpop.f32.mrf.mxu3 }
 0x25d   :  { %300 = vmatmul.msk.f32.vlgmr.msrb.gmra.mxu3 %vm63_vm0, %v196_v42 }
 0x264   :  { %v198_v43 = vpop.f32.mrf.mxu3 }
 0x2e0   :  { %v225_v47 = vpop.f32.mrf.mxu3 }
 0x2e1   :  { %v226_v48 = vadd.f32 %v225_v47, %v204_v46 }
 0x2e3   :  { %v228_v49 = vmax.f32 %v226_v48, 0.0 }
 0x2e5   :  { %301 = vmatmul.msk.f32.vlgmr.msra.gmra.mxu3 %vm63_vm0, %v228_v49 }
 0x368   :  { %v253_v50 = vpop.f32.mrf.mxu3 }
 0x369   :  { %256 = vst [vmem:[%s439_s9] sm:$0xff] %v253_v50 }

</bundles_post_ra>
